<compile_context>
chip_gen: v6e
topology: v6e:2x2x1
jax: 0.10.0
libtpu: 0.0.40
codegen_flags: <defaults>
</compile_context>

<pallas_src>
import functools

import jax
import jax.numpy as jnp
from jax import lax
from jax.experimental import pallas as pl
from jax.experimental.pallas import tpu as pltpu

LANES = 128            # lane tile (last dim)
SUBLANES = 8           # sublane tile (second-to-last dim)
MAX_BLOCK_ROWS = 8192  # 8192 x 128 f32 = 4 MiB per input per grid step
NCORES = 2             # outer "parallel" grid axis (v7x megacore; loop on 1-TC chips)


def _round_up(x, m):
    return ((x + m - 1) // m) * m


def _rmse_partial_kernel(yhat_ref, y_ref, out_ref, acc_ref, *, rows, block_rows):
    c = pl.program_id(0)            # core split ("parallel")
    i = pl.program_id(1)            # reduction steps ("arbitrary")
    n_inner = pl.num_programs(1)

    @pl.when(i == 0)
    def _init():
        acc_ref[...] = jnp.zeros_like(acc_ref)

    d = yhat_ref[...].astype(jnp.float32) - y_ref[...].astype(jnp.float32)
    sq = d * d

    # Mask rows outside the real array: the partial last block and any
    # duplicated (index-clamped) blocks assigned to the spare core.
    start = (c * n_inner + i) * block_rows
    row_idx = start + lax.broadcasted_iota(jnp.int32, (block_rows, LANES), 0)
    sq = jnp.where(row_idx < rows, sq, 0.0)

    # Tile-wise partial reduce into a single-vreg (8, 128) accumulator.
    # The reshape is a pure relabeling of (8, 128) tiles (no data movement)
    # and the axis-0 sum is plain vreg adds on the VPU.
    acc_ref[...] += sq.reshape(block_rows // SUBLANES, SUBLANES, LANES).sum(axis=0)

    @pl.when(i == n_inner - 1)
    def _finalize():
        # One-time cross-sublane reduce per core -> (1, 128) partial sums.
        out_ref[...] = jnp.sum(acc_ref[...], axis=0, keepdims=True)


def _partial_sum_squares(yhat2d, y2d, rows, block_rows, nblocks, n_inner):
    kernel = functools.partial(
        _rmse_partial_kernel, rows=rows, block_rows=block_rows)

    def in_map(c, i):
        # Clamp so the DMA never walks past the array; out-of-range logical
        # blocks are fully masked to zero inside the kernel.
        return (jnp.minimum(c * n_inner + i, nblocks - 1), 0)

    itemsize = jnp.dtype(yhat2d.dtype).itemsize
    cost = pl.CostEstimate(
        flops=3 * rows * LANES,
        transcendentals=0,
        bytes_accessed=2 * rows * LANES * itemsize + NCORES * LANES * 4,
    )

    return pl.pallas_call(
        kernel,
        out_shape=jax.ShapeDtypeStruct((NCORES, 1, LANES), jnp.float32),
        grid_spec=pltpu.PrefetchScalarGridSpec(
            num_scalar_prefetch=0,
            grid=(NCORES, n_inner),
            in_specs=[
                pl.BlockSpec((block_rows, LANES), in_map),
                pl.BlockSpec((block_rows, LANES), in_map),
            ],
            out_specs=pl.BlockSpec((None, 1, LANES), lambda c, i: (c, 0, 0)),
            scratch_shapes=[pltpu.VMEM((SUBLANES, LANES), jnp.float32)],
        ),
        compiler_params=pltpu.CompilerParams(
            dimension_semantics=("parallel", "arbitrary"),
            vmem_limit_bytes=32 * 1024 * 1024,
        ),
        cost_estimate=cost,
    )(yhat2d, y2d)


def rmse_loss(yhat, y, eps=1e-08):
    """Root mean square error: sqrt(mean((yhat - y)**2) + eps)."""
    assert yhat.shape == y.shape, "yhat and y must have the same shape"
    count = yhat.size

    yhat_flat = jnp.ravel(yhat)
    y_flat = jnp.ravel(y)

    main = (count // LANES) * LANES   # lane-aligned bulk processed by the kernel
    tail = count - main

    total = jnp.float32(0.0)
    if main > 0:
        rows = main // LANES
        block_rows = min(MAX_BLOCK_ROWS, _round_up(rows, SUBLANES))
        nblocks = pl.cdiv(rows, block_rows)
        n_inner = pl.cdiv(nblocks, NCORES)

        yhat2d = yhat_flat[:main].reshape(rows, LANES)
        y2d = y_flat[:main].reshape(rows, LANES)

        partial = _partial_sum_squares(yhat2d, y2d, rows, block_rows,
                                       nblocks, n_inner)
        total = total + jnp.sum(partial)

    if tail > 0:
        # Lane-unaligned remainder (< 128 elements): negligible plain-JAX work.
        dt = (yhat_flat[main:].astype(jnp.float32)
              - y_flat[main:].astype(jnp.float32))
        total = total + jnp.sum(dt * dt)

    # Scalar epilogue (mean + eps + sqrt) in the wrapper so per-core partial
    # sums can be combined.
    return jnp.sqrt(total / jnp.float32(count) + jnp.float32(eps))


if __name__ == "__main__":
    key = jax.random.PRNGKey(0)
    k1, k2 = jax.random.split(key)
    # NCHW-style inputs, small shapes.
    yhat = jax.random.normal(k1, (2, 4, 16, 16), dtype=jnp.float32)
    y = jax.random.normal(k2, (2, 4, 16, 16), dtype=jnp.float32)

    loss = rmse_loss(yhat, y)
    jax.block_until_ready(loss)

    # Reference check in plain JAX.
    ref = jnp.sqrt(jnp.mean((yhat - y) ** 2) + 1e-08)
    assert jnp.allclose(loss, ref, rtol=1e-5, atol=1e-6), (loss, ref)

    print("KERNEL_OK")
</pallas_src>

<mosaic_0001>
module attributes {stable_mosaic.version = 11 : i64} {
  func.func @_rmse_partial_kernel(%arg0: i32, %arg1: i32, %arg2: memref<16x128xf32, #tpu.memory_space<vmem>>, %arg3: memref<16x128xf32, #tpu.memory_space<vmem>>, %arg4: memref<1x1x128xf32, #tpu.memory_space<vmem>>, %arg5: memref<8x128xf32, #tpu.memory_space<vmem>>) attributes {dimension_semantics = [#tpu.dimension_semantics<parallel>, #tpu.dimension_semantics<arbitrary>], iteration_bounds = array<i64: 2, 1>, scalar_prefetch = 0 : i64, scratch_operands = 1 : i64, tpu.core_type = #tpu.core_type<tc>, window_params = [{transform_indices = @transform_0, window_bounds = array<i64: 16, 128>}, {transform_indices = @transform_1, window_bounds = array<i64: 16, 128>}, {transform_indices = @transform_2, window_bounds = array<i64: 1, 1, 128>}]} {
    %c0_i32 = arith.constant 0 : i32
    %0 = arith.cmpi eq, %arg1, %c0_i32 : i32
    %1 = arith.extui %0 : i1 to i32
    %c0_i32_0 = arith.constant 0 : i32
    %2 = arith.cmpi ne, %1, %c0_i32_0 : i32
    scf.if %2 {
      %cst_12 = arith.constant 0.000000e+00 : f32
      %25 = vector.broadcast %cst_12 : f32 to vector<8x128xf32>
      %c0_13 = arith.constant 0 : index
      %c0_14 = arith.constant 0 : index
      %26 = vector.load %arg5[%c0_13, %c0_14] : memref<8x128xf32, #tpu.memory_space<vmem>>, vector<8x128xf32>
      tpu.vector_store %arg5[%c0_13, %c0_14], %25 {strides = array<i32>} : memref<8x128xf32, #tpu.memory_space<vmem>>, vector<8x128xf32>,
    } else {
    }
    %c0 = arith.constant 0 : index
    %c0_1 = arith.constant 0 : index
    %3 = vector.load %arg2[%c0, %c0_1] : memref<16x128xf32, #tpu.memory_space<vmem>>, vector<16x128xf32>
    %c0_2 = arith.constant 0 : index
    %c0_3 = arith.constant 0 : index
    %4 = vector.load %arg3[%c0_2, %c0_3] : memref<16x128xf32, #tpu.memory_space<vmem>>, vector<16x128xf32>
    %5 = arith.subf %3, %4 : vector<16x128xf32>
    %6 = arith.mulf %5, %5 : vector<16x128xf32>
    %c1_i32 = arith.constant 1 : i32
    %7 = arith.muli %arg0, %c1_i32 : i32
    %8 = arith.addi %7, %arg1 : i32
    %c16_i32 = arith.constant 16 : i32
    %9 = arith.muli %8, %c16_i32 : i32
    %10 = tpu.iota {dimensions = array<i32: 0>} : vector<16x128xi32>
    %11 = vector.broadcast %9 : i32 to vector<16x128xi32>
    %12 = arith.addi %11, %10 : vector<16x128xi32>
    %c16_i32_4 = arith.constant 16 : i32
    %13 = vector.broadcast %c16_i32_4 : i32 to vector<16x128xi32>
    %14 = arith.cmpi slt, %12, %13 : vector<16x128xi32>
    %cst = arith.constant 0.000000e+00 : f32
    %15 = vector.broadcast %cst : f32 to vector<16x128xf32>
    %16 = arith.select %14, %6, %15 : vector<16x128xi1>, vector<16x128xf32>
    %c0_5 = arith.constant 0 : index
    %c0_6 = arith.constant 0 : index
    %17 = vector.load %arg5[%c0_5, %c0_6] : memref<8x128xf32, #tpu.memory_space<vmem>>, vector<8x128xf32>
    %18 = vector.shape_cast %16 : vector<16x128xf32> to vector<2x8x128xf32>
    %cst_7 = arith.constant dense<0.000000e+00> : vector<8x128xf32>
    %19 = vector.multi_reduction <add>, %18, %cst_7 [0] : vector<2x8x128xf32> to vector<8x128xf32>
    %20 = arith.addf %17, %19 : vector<8x128xf32>
    %c0_8 = arith.constant 0 : index
    %c0_9 = arith.constant 0 : index
    %21 = vector.load %arg5[%c0_8, %c0_9] : memref<8x128xf32, #tpu.memory_space<vmem>>, vector<8x128xf32>
    tpu.vector_store %arg5[%c0_8, %c0_9], %20 {strides = array<i32>} : memref<8x128xf32, #tpu.memory_space<vmem>>, vector<8x128xf32>,
    %c0_i32_10 = arith.constant 0 : i32
    %22 = arith.cmpi eq, %arg1, %c0_i32_10 : i32
    %23 = arith.extui %22 : i1 to i32
    %c0_i32_11 = arith.constant 0 : i32
    %24 = arith.cmpi ne, %23, %c0_i32_11 : i32
    scf.if %24 {
      %c0_12 = arith.constant 0 : index
      %c0_13 = arith.constant 0 : index
      %25 = vector.load %arg5[%c0_12, %c0_13] : memref<8x128xf32, #tpu.memory_space<vmem>>, vector<8x128xf32>
      %cst_14 = arith.constant dense<0.000000e+00> : vector<128xf32>
      %26 = vector.multi_reduction <add>, %25, %cst_14 [0] : vector<8x128xf32> to vector<128xf32>
      %27 = vector.shape_cast %26 : vector<128xf32> to vector<1x128xf32>
      %c0_15 = arith.constant 0 : index
      %c0_16 = arith.constant 0 : index
      %c0_17 = arith.constant 0 : index
      %28 = vector.load %arg4[%c0_15, %c0_16, %c0_17] : memref<1x1x128xf32, #tpu.memory_space<vmem>>, vector<1x1x128xf32>
      %29 = vector.shape_cast %28 : vector<1x1x128xf32> to vector<1x128xf32>
      %30 = vector.shape_cast %27 : vector<1x128xf32> to vector<1x1x128xf32>
      tpu.vector_store %arg4[%c0_15, %c0_16, %c0_17], %30 {strides = array<i32>} : memref<1x1x128xf32, #tpu.memory_space<vmem>>, vector<1x1x128xf32>,
    } else {
    }
    return
  }
  func.func @transform_0(%arg0: i32, %arg1: i32) -> (i32, i32) {
    %c1_i32 = arith.constant 1 : i32
    %0 = arith.muli %arg0, %c1_i32 : i32
    %1 = arith.addi %0, %arg1 : i32
    %c0_i32 = arith.constant 0 : i32
    %2 = arith.minsi %1, %c0_i32 : i32
    %c0_i32_0 = arith.constant 0 : i32
    %c0_i32_1 = arith.constant 0 : i32
    return %2, %c0_i32_0 : i32, i32
  }
  func.func @transform_1(%arg0: i32, %arg1: i32) -> (i32, i32) {
    %c1_i32 = arith.constant 1 : i32
    %0 = arith.muli %arg0, %c1_i32 : i32
    %1 = arith.addi %0, %arg1 : i32
    %c0_i32 = arith.constant 0 : i32
    %2 = arith.minsi %1, %c0_i32 : i32
    %c0_i32_0 = arith.constant 0 : i32
    %c0_i32_1 = arith.constant 0 : i32
    return %2, %c0_i32_0 : i32, i32
  }
  func.func @transform_2(%arg0: i32, %arg1: i32) -> (i32, i32, i32) {
    %c0_i32 = arith.constant 0 : i32
    %c0_i32_0 = arith.constant 0 : i32
    %c0_i32_1 = arith.constant 0 : i32
    return %arg0, %c0_i32, %c0_i32_0 : i32, i32, i32
  }
}

</mosaic_0001>

<bundles_post_ra>
// kernel: tpu_custom_call.1
= control target key start
LH: loop header
LB: loop body
LE: loop exit
PB: predicated region body
PF: predicated region fallthrough
CT: control target
= control target key end

     0   :  { %7 = vsyncpa [#allocation4], 0  ;;  %s866_s0 = inlined_call_operand.hbm [shape: f32[16,128], index: 0, kind: input, shape index: {}]   ;;  %s867_s1 = inlined_call_operand.hbm [shape: f32[16,128], index: 1, kind: input, shape index: {}]   ;;  %s868_s2 = inlined_call_operand.hbm [shape: f32[2,1,128], index: 2, kind: output, shape index: {}]  }
   0x1   :  { %9 = vsyncpa [#allocation4 + $0x1], 0 }
   0x2   :  { %10 = vsyncpa [#allocation7], 0 }
   0x3   :  { %12 = vsyncpa [#allocation7 + $0x1], 0 }
   0x4   :  { %13 = vsyncpa [#allocation5], 0 }
   0x5   :  { %15 = vsyncpa [#allocation5 + $0x1], 0  ;;  %s684_s9 = smov 0   ;;  %s686_s10 = smov 0  }
   0x6   :  { %s688_s11 = smov 0   ;;  %s690_s12 = smov 0  }
   0x7   :  { %s692_s13 = smov 0   ;;  %s694_s14 = smov 0  }
   0x8   :  { %s696_s15 = smov 0   ;;  %s698_s16 = smov 0  }
   0x9 LB: > { %s389_s17 = sadd.s32 4294967295, %s662_s16   ;;  %s390_s18 = sadd.s32 4294967294, %s662_s16   ;;  %s662_s16 = sphi %s698_s16, %s21_s16   ;;  %s658_s15 = sphi %s696_s15, %s887_s15   ;;  %s654_s14 = sphi %s694_s14, %s886_s14   ;;  %s650_s13 = sphi %s692_s13, %s856_s13   ;;  %s646_s12 = sphi %s690_s12, %s885_s12   ;;  %s642_s11 = sphi %s688_s11, %s884_s11   ;;  %s638_s10 = sphi %s686_s10, %s883_s10   ;;  %s634_s9 = sphi %s684_s9, %s882_s9  }
   0xa   : > { %s33_s19 = sadd.s32 1, %s658_s15  ;;  %p631_p1 = scmp.ne.s32.totalorder %s650_s13, 0 }
   0xb   : > { %p35_p0 = scmp.ge.s32.totalorder %s33_s19, 2  ;;  %p54_p2 = scmp.eq.s32.totalorder %s662_s16, 0 }
   0xc   : > { %p59_p3 = scmp.ne.s32.totalorder %s650_s13, %s646_s12  ;;  %p60_p5 = scmp.eq.s32.totalorder %s389_s17, 0 }
   0xd   : > { %s889_s19 = smov (%p35_p0, %s33_s19), 0  ;;  %p730_p4 = por %p631_p1, %p54_p2 }
   0xe   : > { %p734_p6 = por %p60_p5, %p59_p3  ;;  %s101_s22 = ssub.s32 %s658_s15, %s889_s19 }
   0xf   : > { %p102_p7 = scmp.eq.s32.totalorder %s101_s22, 0  ;;  %s104_s23 = sadd.s32 1, %s642_s11 }
  0x10   : > { %s872_s21 = scalar_select %p734_p6, 1, 0 }
  0x11   : > { %s742_s24 = scalar_select %p102_p7, %s642_s11, %s104_s23  }
  0x12   : > { %p114_p8 = scmp.ne.s32.totalorder %s642_s11, %s638_s10  ;;  %p115_p9 = scmp.eq.s32.totalorder %s389_s17, 1 }
  0x13   : > { %p120_p10 = scmp.ne.s32.totalorder %s638_s10, %s634_s9  ;;  %p121_p11 = scmp.eq.s32.totalorder %s390_s18, 1 }
  0x14   : > { %p748_p12 = por %p115_p9, %p114_p8  ;;  %p425_p1 = scmp.lt.s32.totalorder %s662_s16, 2 }
  0x15   : > { %p753_p0 = por %p121_p11, %p120_p10  ;;  %s664_s27 = smov [#allocation3]  }
  0x16   : > { %s873_s25 = scalar_select %p748_p12, 1, 0 }
  0x17   : > { %s874_s26 = scalar_select %p753_p0, 1, 0 }
  0x18   : > { %s155_s28 = sshll.u32 %s664_s27, 4  ;;  %p760_p2 = pnand %p425_p1, %p730_p4  ;;  %s156_s28 = int_to_ptr.vmem [resolvable:$true] %s155_s28 }
  0x19   : > { %s501_s4 = scalar_lea.hbm %s866_s0, 256 }
  0x1a   : > { %p502_p3 = scmp.ne.s32.totalorder %s866_s0, %s501_s4  ;;  %p503_p5 = pneg %p760_p2 }
  0x1b   : > { %p508_p8 = scmp.lt.s32.totalorder %s501_s4, %s501_s4 }
  0x1c   : > { %p504_p7 = pnand %p503_p5, %p502_p3 }
  0x1e   : > { %p505_p4 = pneg %p504_p7 }
  0x20   : > { %p510_p9 = pnand %p508_p8, %p505_p4 }
  0x22   : > { %513 = shalt.err (!%p510_p9)
}
  0x23   : > { %s514_s7 = scalar_lea.vmem %s156_s28, 256  ;;  %s521_s8 = scalar_lea.vmem %s156_s28, 512 }
  0x24   : > { %p515_p10 = scmp.ne.s32.totalorder %s156_s28, %s514_s7  ;;  %p522_p13 = scmp.lt.s32.totalorder %s156_s28, %s156_s28 }
  0x25   : > { %p523_p0 = scmp.lt.s32.totalorder %s521_s8, %s514_s7 }
  0x26   : > { %p517_p11 = pnand %p515_p10, %p503_p5 }
  0x27   : > { %p524_p12 = por %p523_p0, %p522_p13 }
  0x28   : > { %p518_p1 = pneg %p517_p11 }
  0x2a   : > { %p525_p6 = pnand %p524_p12, %p518_p1 }
  0x2c   : > { %528 = shalt.err (!%p525_p6)
}
  0x2d   : > { %s665_s12 = smov 128   ;;  %s666_s17 = smov 8  }
  0x2e   : > { %417 = dma.hbm_to_vmem [thread:$0]  (!%p760_p2), %s866_s0, 256, %s156_s28, [#allocation4], %s665_s12, %s665_s12, %s666_s17  }
  0x2f   : > { %p399_p3 = scmp.ge.s32.totalorder %s662_s16, 1  ;;  %p187_p7 = scmp.lt.s32.totalorder %s662_s16, 3 }
  0x30   : > { %s667_s23 = smov [#allocation6]   ;;  %s529_s4 = scalar_lea.hbm %s867_s1, 256 }
  0x31   : > { %p785_p4 = pnand %p399_p3, %p187_p7  ;;  %s179_s27 = sshll.u32 %s667_s23, 4  ;;  %s180_s27 = int_to_ptr.vmem [resolvable:$true] %s179_s27 }
  0x32   : > { %p530_p6 = scmp.ne.s32.totalorder %s867_s1, %s529_s4  ;;  %p536_p0 = scmp.lt.s32.totalorder %s529_s4, %s529_s4 }
  0x33   : > { %s876_s22 = scalar_select %p785_p4, 1, 0 }
  0x34   : > { %p532_p12 = pnand %p530_p6, %p503_p5 }
  0x36   : > { %p533_p13 = pneg %p532_p12 }
  0x38   : > { %p538_p8 = pnand %p536_p0, %p533_p13 }
  0x3a   : > { %541 = shalt.err (!%p538_p8)
}
  0x3b   : > { %s542_s28 = scalar_lea.vmem %s180_s27, 256  ;;  %s549_s7 = scalar_lea.vmem %s180_s27, 512 }
  0x3c   : > { %p543_p9 = scmp.ne.s32.totalorder %s180_s27, %s542_s28  ;;  %p550_p1 = scmp.lt.s32.totalorder %s180_s27, %s180_s27 }
  0x3d   : > { %p551_p3 = scmp.lt.s32.totalorder %s549_s7, %s542_s28 }
  0x3e   : > { %p545_p10 = pnand %p543_p9, %p503_p5 }
  0x3f   : > { %p552_p7 = por %p551_p3, %p550_p1 }
  0x40   : > { %p546_p11 = pneg %p545_p10 }
  0x42   : > { %p553_p4 = pnand %p552_p7, %p546_p11 }
  0x44   : > { %556 = shalt.err (!%p553_p4)
}
  0x45   : > { %420 = dma.hbm_to_vmem [thread:$0]  (!%p760_p2), %s867_s1, 256, %s180_s27, [#allocation7], %s665_s12, %s665_s12, %s666_s17  }
  0x46   : > { %p877_p6 = scmp.ne.s32.totalorder %s876_s22, 0 }
  0x47   : > { %s193_s20 = sand.u32 (!%p877_p6), 1, %s650_s13   ;;  %p878_p5 = scmp.ne.s32.totalorder (!%p877_p6), %s872_s21, 0 }
  0x48   : > { %191 = sbr.rel (%p877_p6) target bundleno = 117 (0x75), region = 28  ;;  %s400_s23 = sshll.u32 (!%p877_p6), %s193_s20, 4 }
  0x49   : > { %s194_s30 = scalar_lea.sflag (!%p877_p6), [#allocation4], %s193_s20  ;;  %s197_s3 = scalar_lea.vmem (!%p877_p6), [#allocation3], %s400_s23 }
  0x4d   : > { %620 = dma.done.wait (%p878_p5), %s194_s30, 256  }
  0x4e   : > { %622 = vsyncadd (%p878_p5), %s194_s30, 4294967040  ;;  %s203_s29 = scalar_lea.sflag [#allocation7], %s193_s20  ;;  %s206_s4 = scalar_lea.vmem [#allocation6], %s400_s23 }
  0x4f   : > { %624 = dma.done.wait (%p878_p5), %s203_s29, 256  }
  0x50   : > { %626 = vsyncadd (%p878_p5), %s203_s29, 4294967040  ;;  %s402_s12 = sshll.u32 %s654_s14, 4  ;;  %v254_v0 = vlaneseq  ;;  %v244_v6 = vld [vmem:[%s197_s3] sm:$0xff]  ;;  %v245_v7 = vld [vmem:[%s197_s3 + $0x8] sm:$0xff]  ;;  %s229_s21 = sand.u32 1, %s638_s10  }
  0x51   : > { %v257_v2 = vstv %s402_s12  ;;  %v246_v8 = vld [vmem:[%s206_s4] sm:$0xff]  ;;  %v247_v9 = vld [vmem:[%s206_s4 + $0x8] sm:$0xff]  ;;  %s230_s17 = scalar_lea.vmem [#allocation8], %s229_s21  ;;  %s290_s6 = scalar_lea.hbm %s868_s2, %s402_s12 }
  0x52   : > { %v255_v1 = vshrl.u32 %v254_v0, 7  ;;  %v248_v10 = vsub.f32 %v244_v6, %v246_v8  ;;  %v249_v11 = vsub.f32 %v245_v7, %v247_v9  ;;  %s292_s22 = sshll.u32 %s230_s17, 4  ;;  %s280_s28 = scalar_lea.sflag [#allocation5], %s229_s21  ;;  %s293_s22 = int_to_ptr.vmem [resolvable:$true] %s292_s22 }
  0x53   : > { %s557_s7 = scalar_lea.vmem %s293_s22, 16  ;;  %p879_p4 = scmp.ne.s32.totalorder %s873_s25, 0 }
  0x54   : > { %v256_v3 = vadd.s32 8, %v255_v1  ;;  %v258_v4 = vadd.s32 %v257_v2, %v255_v1  ;;  %v250_v12 = vmul.f32 %v248_v10, %v248_v10  ;;  %v251_v13 = vmul.f32 %v249_v11, %v249_v11  ;;  %p558_p2 = scmp.ne.s32.totalorder %s293_s22, %s557_s7  ;;  %s668_s8 = smov [#allocation8]  }
  0x55   : > { %s561_s18 = sshll.u32 %s668_s8, 4  ;;  %s562_s18 = int_to_ptr.vmem [resolvable:$false] %s561_s18 }
  0x56   : > { %v259_v5 = vadd.s32 %v257_v2, %v256_v3  ;;  %vm260_vm0 = vcmp.lt.s32.totalorder %v258_v4, 16  ;;  %p559_p12 = pnand %p558_p2, %p879_p4  ;;  %s563_s20 = scalar_lea.vmem %s562_s18, 32 }
  0x57   : > { %v262_v14 = vsel %vm260_vm0, %v250_v12, 0.0  ;;  %p564_p0 = scmp.lt.s32.totalorder %s293_s22, %s562_s18  ;;  %p565_p8 = scmp.lt.s32.totalorder %s563_s20, %s557_s7 }
  0x58   : > { %vm261_vm1 = vcmp.lt.s32.totalorder %v259_v5, 16  ;;  %p560_p13 = pneg %p559_p12 }
  0x59   : > { %v263_v15 = vsel %vm261_vm1, %v251_v13, 0.0  ;;  %p566_p9 = por %p565_p8, %p564_p0 }
  0x5a   : > { %v265_v16 = vadd.f32 %v263_v15, %v262_v14 }
  0x5b   : > { %p567_p10 = pnand %p566_p9, %p560_p13 }
  0x5c   : > { %v272_v17 = vrot.slane %v265_v16, 4 }
  0x5e   : > { %v273_v18 = vadd.f32 %v272_v17, %v265_v16 }
  0x60   : > { %v274_v19 = vrot.slane %v273_v18, 2 }
  0x62   : > { %v275_v20 = vadd.f32 %v274_v19, %v273_v18 }
  0x64   : > { %v276_v21 = vrot.slane %v275_v20, 1 }
  0x66   : > { %v277_v22 = vadd.f32 %v276_v21, %v275_v20 }
  0x68   : > { %278 = vst [vmem:[%s230_s17] sm:$0x1] %v277_v22 }
  0x69   : > { %570 = shalt.err (!%p567_p10)
}
  0x6a   : > { %s571_s14 = scalar_lea.hbm %s290_s6, 16  ;;  %s575_s3 = scalar_lea.hbm %s868_s2, 32 }
  0x6b   : > { %p572_p11 = scmp.ne.s32.totalorder %s290_s6, %s571_s14  ;;  %p576_p7 = scmp.lt.s32.totalorder %s290_s6, %s868_s2 }
  0x6c   : > { %p577_p6 = scmp.lt.s32.totalorder %s575_s3, %s571_s14 }
  0x6d   : > { %p573_p1 = pnand %p572_p11, %p879_p4 }
  0x6e   : > { %p578_p5 = por %p577_p6, %p576_p7 }
  0x6f   : > { %p574_p3 = pneg %p573_p1 }
  0x71   : > { %p579_p2 = pnand %p578_p5, %p574_p3 }
  0x73   : > { %582 = shalt.err (!%p579_p2)
}
  0x74   : > { %412 = dma.vmem_to_hbm [thread:$0]  (%p879_p4), %s293_s22, 16, %s290_s6, %s280_s28  }
  0x75 PF: > { %s304_s12 = sand.u32 1, %s634_s9   ;;  %p880_p12 = scmp.ne.s32.totalorder %s874_s26, 0 }
  0x76   : > { %p881_p13 = scmp.ge.s32.totalorder %s662_s16, 2  ;;  %s305_s21 = scalar_lea.sflag [#allocation5], %s304_s12 }
  0x78   : > { %p422_p0 = pnand %p881_p13, %p880_p12 }
  0x7a   : > { %p423_p8 = pneg %p422_p0 }
  0x7c   : > { %628 = dma.done.wait (%p423_p8), %s305_s21, 16  }
  0x7d   : > { %630 = vsyncadd (%p423_p8), %s305_s21, 4294967280  ;;  %s21_s16 = sadd.s32 1, %s662_s16   ;;  %s882_s9 = smov %s638_s10 }
  0x7e   : > { %p18_p9 = scmp.ge.s32.totalorder %s21_s16, 4   ;;  %s883_s10 = smov %s642_s11 }
  0x7f   : > { %s884_s11 = smov %s742_s24  ;;  %s885_s12 = smov %s650_s13 }
  0x80   : > { %s856_s13 = smov 0   ;;  %s886_s14 = smov %s658_s15 }
  0x81   : > { %s887_s15 = smov %s889_s19  ;;  %20 = sbr.rel (!%p18_p9) target bundleno = 9 (0x9), region = 94 }
  0x86   :  { %309 = vsyncpa [#allocation4], 1 }
  0x87   :  { %311 = vsyncpa [#allocation4 + $0x1], 1 }
  0x88   :  { %312 = vsyncpa [#allocation7], 1 }
  0x89   :  { %314 = vsyncpa [#allocation7 + $0x1], 1 }
  0x8a   :  { %315 = vsyncpa [#allocation5], 1 }
  0x8b   :  { %317 = vsyncpa [#allocation5 + $0x1], 1 }

</bundles_post_ra>
